<compile_context>
chip_gen: v7x
topology: tpu7x:2x2x1
jax: 0.10.0
libtpu: 0.0.40
codegen_flags: <defaults>
</compile_context>

<pallas_src>
import jax
import jax.numpy as jnp
from jax.experimental import pallas as pl
from jax.experimental.pallas import tpu as pltpu

NEG_SLOPE = 0.01  # nn.LeakyReLU default (matches the module's dense_block)


def _leaky_relu(x):
    # Valid because 0 < NEG_SLOPE < 1: max(x, s*x) == leaky_relu(x).
    return jnp.maximum(x, NEG_SLOPE * x)


def _round_up(n, m):
    return ((n + m - 1) // m) * m


def disc_fnn_kernel(x_ref, cb_ref, w1_ref, w2_ref, b2_ref, w3r_ref, b3_ref, o_ref):
    w_dtype = w1_ref.dtype  # bf16 (default) or f32; activations cast in-kernel to match

    # Layer 1: h1 = leaky(x @ W1x + (emb @ W1e + b1)[condition])  -- single K=d_x matmul;
    # the per-class row (cb_ref, f32) carries both the embedding contribution and b1.
    h1 = jnp.dot(x_ref[...].astype(w_dtype), w1_ref[...],
                 preferred_element_type=jnp.float32)
    h1 = _leaky_relu(h1 + cb_ref[...])                               # (TB, H1p) f32

    # TODO(synk): nn.Dropout(p=0.5) before layer 2 is eval-mode identity (forward-only kernel).
    h2 = jnp.dot(h1.astype(w_dtype), w2_ref[...],
                 preferred_element_type=jnp.float32)
    h2 = _leaky_relu(h2 + b2_ref[...])                               # (TB, H2p) f32

    # Final 1-wide logit, lane-dense: (1, H2p) x (TB, H2p)^T -> (1, TB)
    logit = jax.lax.dot_general(
        w3r_ref[...], h2.astype(w_dtype),
        dimension_numbers=(((1,), (1,)), ((), ())),
        preferred_element_type=jnp.float32,
    ) + b3_ref[...]                                                   # (1, TB) f32
    o_ref[...] = jax.nn.sigmoid(logit).astype(o_ref.dtype)


def _choose_batch_tile(B, *, min_tiles=1, max_tile=2048):
    """Multiple of 256; >= min_tiles grid steps (v7x: pass 2 so both TCs get work)."""
    tb = _round_up(pl.cdiv(B, max(int(min_tiles), 1)), 256)
    return int(max(256, min(max_tile, tb)))


def discriminator_fnn_forward(x, condition, prepared, *, batch_tile=None, min_tiles=1):
    """x: (B, sequence_len*features) f32, condition: (B,) int32 -> (B, 1) f32."""
    B, d_x = x.shape
    cb = prepared["cls_bias"][condition]      # (B, H1p) f32 gather of the tiny per-class table

    w1, w2, b2 = prepared["w1x"], prepared["w2"], prepared["b2"]
    w3r, b3 = prepared["w3r"], prepared["b3"]
    H1p, H2p = w1.shape[1], w2.shape[1]

    tb = _choose_batch_tile(B, min_tiles=min_tiles) if batch_tile is None else int(batch_tile)
    assert tb % 128 == 0, "batch_tile must be a multiple of 128 (lane-dense output block)"
    num_tiles = pl.cdiv(B, tb)
    Bp = num_tiles * tb                       # output allocated padded; inputs NOT padded

    operands = (x, cb, w1, w2, b2, w3r, b3)
    flops = 2 * Bp * (d_x * H1p + H1p * H2p + H2p * 1)
    bytes_accessed = sum(int(a.size) * a.dtype.itemsize for a in operands) + Bp * 4
    cost = pl.CostEstimate(flops=flops, transcendentals=Bp, bytes_accessed=bytes_accessed)

    # Rough per-call VMEM need (double-buffered batch-tiled streams + resident weights + h1/h2
    # temporaries); raise the scoped limit with headroom for big tiles (v5e default is 16 MiB).
    est = (2 * (tb * d_x * x.dtype.itemsize + tb * H1p * 4 + tb * 4)
           + sum(int(w.size) * w.dtype.itemsize for w in (w1, w2, b2, w3r, b3))
           + 2 * tb * H1p * 4)
    vmem_limit = int(min(max(2 * est, 32 << 20), 48 << 20))

    out = pl.pallas_call(
        disc_fnn_kernel,
        out_shape=jax.ShapeDtypeStruct((1, Bp), jnp.float32),
        grid_spec=pltpu.PrefetchScalarGridSpec(
            num_scalar_prefetch=0,
            grid=(num_tiles,),
            in_specs=[
                pl.BlockSpec((tb, d_x), lambda i: (i, 0)),    # x: tiled over batch
                pl.BlockSpec((tb, H1p), lambda i: (i, 0)),    # per-row class bias (f32)
                pl.BlockSpec((d_x, H1p), lambda i: (0, 0)),   # weights: resident full
                pl.BlockSpec((H1p, H2p), lambda i: (0, 0)),
                pl.BlockSpec((1, H2p), lambda i: (0, 0)),
                pl.BlockSpec((1, H2p), lambda i: (0, 0)),     # w3 as a (1, H2p) row
                pl.BlockSpec((1, 1), lambda i: (0, 0)),
            ],
            out_specs=pl.BlockSpec((1, tb), lambda i: (0, i)),  # lane-dense (1, TB) output row
        ),
        compiler_params=pltpu.CompilerParams(
            dimension_semantics=("parallel",),
            vmem_limit_bytes=vmem_limit),
        cost_estimate=cost,
    )(*operands)
    return out[0, :B].reshape(B, 1).astype(jnp.float32)


def init_params(key, *, features, sequence_len, conditions, embeddings, out_features=1):
    """Torch-equivalent (unpadded) parameters; weights stored as (in, out)."""
    input_size = sequence_len * features
    d_in = input_size + embeddings
    h1, h2 = 2 * input_size, 4 * input_size
    ks = jax.random.split(key, 7)

    def linear(kw, kb, fan_in, fan_out):
        bound = 1.0 / jnp.sqrt(jnp.float32(fan_in))
        w = jax.random.uniform(kw, (fan_in, fan_out), jnp.float32, -bound, bound)
        b = jax.random.uniform(kb, (fan_out,), jnp.float32, -bound, bound)
        return w, b

    emb = jax.random.normal(ks[0], (conditions, embeddings), jnp.float32)  # nn.Embedding ~ N(0,1)
    w1, b1 = linear(ks[1], ks[2], d_in, h1)
    w2, b2 = linear(ks[3], ks[4], h1, h2)
    w3, b3 = linear(ks[5], ks[6], h2, out_features)
    return {"emb": emb, "w1": w1, "b1": b1, "w2": w2, "b2": b2, "w3": w3, "b3": b3}


def prepare_params(params, *, input_size, weight_dtype=jnp.bfloat16):
    """One-time layout prep.

    * Split W1 into the x-part (kept as the layer-1 weight) and the embedding part, which is
      folded with b1 into a per-class f32 row table cls_bias = emb @ W1e + b1.
    * Zero-pad hidden dims to 128-lane multiples (exact math).
    * Cast matmul weights once to weight_dtype (bf16 default -> single-pass MXU); additive
      biases / cls_bias stay f32 since they are added to the f32 accumulator.
    """
    w1, b1 = params["w1"], params["b1"]
    w2, b2 = params["w2"], params["b2"]
    w3, b3 = params["w3"], params["b3"]
    h1, h2 = w1.shape[1], w2.shape[1]
    assert w3.shape[1] == 1, "lane-dense output path assumes out_features == 1"
    h1p, h2p = _round_up(h1, 128), _round_up(h2, 128)

    w1x = jnp.pad(w1[:input_size], ((0, 0), (0, h1p - h1))).astype(weight_dtype)
    # Per-class layer-1 bias row: emb[c] @ W1e + b1, f32, lane-padded.
    cls_bias = params["emb"] @ w1[input_size:] + b1[None, :]
    cls_bias = jnp.pad(cls_bias, ((0, 0), (0, h1p - h1))).astype(jnp.float32)

    w2p = jnp.pad(w2, ((0, h1p - h1), (0, h2p - h2))).astype(weight_dtype)
    b2p = jnp.pad(b2.reshape(1, -1), ((0, 0), (0, h2p - h2))).astype(jnp.float32)
    w3r = jnp.pad(w3, ((0, h2p - h2), (0, 0))).T.astype(weight_dtype)   # (1, h2p) row vector
    b3p = b3.reshape(1, 1).astype(jnp.float32)
    return {"cls_bias": cls_bias, "w1x": w1x, "w2": w2p, "b2": b2p, "w3r": w3r, "b3": b3p}


def reference_forward(x, condition, params):
    emb = params["emb"][condition]
    xc = jnp.concatenate([x, emb], axis=1)
    lrelu = lambda t: jnp.where(t >= 0, t, NEG_SLOPE * t)
    h1 = lrelu(xc @ params["w1"] + params["b1"])
    h2 = lrelu(h1 @ params["w2"] + params["b2"])
    return jax.nn.sigmoid(h2 @ params["w3"] + params["b3"])


if __name__ == "__main__":
    # Module-consistent shapes: features=2, sequence_len=8 -> input_size=16, 5 classes, emb=4.
    FEATURES, SEQ_LEN, CONDITIONS, EMBEDDINGS, OUT = 2, 8, 5, 4, 1
    INPUT_SIZE = SEQ_LEN * FEATURES

    key = jax.random.PRNGKey(0)
    k_params, k_x, k_c, k_x2, k_c2 = jax.random.split(key, 5)
    params = init_params(k_params, features=FEATURES, sequence_len=SEQ_LEN,
                         conditions=CONDITIONS, embeddings=EMBEDDINGS, out_features=OUT)
    prepared_f32 = prepare_params(params, input_size=INPUT_SIZE, weight_dtype=jnp.float32)
    prepared_bf16 = prepare_params(params, input_size=INPUT_SIZE, weight_dtype=jnp.bfloat16)

    # Main check (f32 weights, strict): 2 batch tiles of 256 via min_tiles=2 (v7x-style split).
    B1 = 512
    x1 = jax.random.normal(k_x, (B1, INPUT_SIZE), jnp.float32)
    c1 = jax.random.randint(k_c, (B1,), 0, CONDITIONS, jnp.int32)
    out1 = jax.block_until_ready(
        discriminator_fnn_forward(x1, c1, prepared_f32, min_tiles=2))
    ref1 = reference_forward(x1, c1, params)
    assert out1.shape == (B1, OUT)
    assert jnp.allclose(out1, ref1, atol=1e-5, rtol=1e-5), "mismatch vs reference (f32, B=512)"

    # Ragged batch (B not a multiple of the tile): exercises the no-pad partial-block path.
    B2 = 300
    x2 = jax.random.normal(k_x2, (B2, INPUT_SIZE), jnp.float32)
    c2 = jax.random.randint(k_c2, (B2,), 0, CONDITIONS, jnp.int32)
    out2 = jax.block_until_ready(
        discriminator_fnn_forward(x2, c2, prepared_f32, batch_tile=256))
    ref2 = reference_forward(x2, c2, params)
    assert out2.shape == (B2, OUT)
    assert jnp.allclose(out2, ref2, atol=1e-5, rtol=1e-5), "mismatch vs reference (f32, B=300)"

    # Tiny batch (single mostly-padded tile).
    B3 = 4
    out3 = jax.block_until_ready(
        discriminator_fnn_forward(x2[:B3], c2[:B3], prepared_f32))
    assert out3.shape == (B3, OUT)
    assert jnp.allclose(out3, ref2[:B3], atol=1e-5, rtol=1e-5), "mismatch vs reference (f32, B=4)"

    # Default perf config: bf16 weights + in-kernel activation cast, f32 accumulation.
    out_bf = jax.block_until_ready(
        discriminator_fnn_forward(x1, c1, prepared_bf16, min_tiles=2))
    assert out_bf.shape == (B1, OUT)
    assert jnp.allclose(out_bf, ref1, atol=2e-2, rtol=0), "mismatch vs reference (bf16 weights)"

    print("KERNEL_OK")
</pallas_src>

<mosaic_0001>
module attributes {stable_mosaic.version = 11 : i64} {
  func.func @disc_fnn_kernel(%arg0: i32, %arg1: memref<256x16xf32, #tpu.memory_space<vmem>>, %arg2: memref<256x128xf32, #tpu.memory_space<vmem>>, %arg3: memref<16x128xf32, #tpu.memory_space<vmem>>, %arg4: memref<128x128xf32, #tpu.memory_space<vmem>>, %arg5: memref<1x128xf32, #tpu.memory_space<vmem>>, %arg6: memref<1x128xf32, #tpu.memory_space<vmem>>, %arg7: memref<1x1xf32, #tpu.memory_space<vmem>>, %arg8: memref<1x256xf32, #tpu.memory_space<vmem>>) attributes {dimension_semantics = [#tpu.dimension_semantics<parallel>], iteration_bounds = array<i64: 2>, scalar_prefetch = 0 : i64, scratch_operands = 0 : i64, tpu.core_type = #tpu.core_type<tc>, window_params = [{transform_indices = @transform_0, window_bounds = array<i64: 256, 16>}, {transform_indices = @transform_1, window_bounds = array<i64: 256, 128>}, {pipeline_mode = #tpu.pipeline_mode<synchronous>, transform_indices = @transform_2, window_bounds = array<i64: 16, 128>}, {pipeline_mode = #tpu.pipeline_mode<synchronous>, transform_indices = @transform_3, window_bounds = array<i64: 128, 128>}, {pipeline_mode = #tpu.pipeline_mode<synchronous>, transform_indices = @transform_4, window_bounds = array<i64: 1, 128>}, {pipeline_mode = #tpu.pipeline_mode<synchronous>, transform_indices = @transform_5, window_bounds = array<i64: 1, 128>}, {pipeline_mode = #tpu.pipeline_mode<synchronous>, transform_indices = @transform_6, window_bounds = array<i64: 1, 1>}, {transform_indices = @transform_7, window_bounds = array<i64: 1, 256>}]} {
    %c0 = arith.constant 0 : index
    %c0_0 = arith.constant 0 : index
    %0 = vector.load %arg1[%c0, %c0_0] : memref<256x16xf32, #tpu.memory_space<vmem>>, vector<256x16xf32>
    %c0_1 = arith.constant 0 : index
    %c0_2 = arith.constant 0 : index
    %1 = vector.load %arg3[%c0_1, %c0_2] : memref<16x128xf32, #tpu.memory_space<vmem>>, vector<16x128xf32>
    %cst = arith.constant dense<0.000000e+00> : vector<256x128xf32>
    %2 = tpu.matmul %0, %1, %cst {dimension_numbers = #tpu.dot_dimension_numbers<[1], [0], [0], [1], [0, 0, 1, 1], [], []>} : vector<256x16xf32>, vector<16x128xf32>, vector<256x128xf32> -> vector<256x128xf32>
    %c0_3 = arith.constant 0 : index
    %c0_4 = arith.constant 0 : index
    %3 = vector.load %arg2[%c0_3, %c0_4] : memref<256x128xf32, #tpu.memory_space<vmem>>, vector<256x128xf32>
    %4 = arith.addf %2, %3 : vector<256x128xf32>
    %cst_5 = arith.constant 0.00999999977 : f32
    %5 = vector.broadcast %cst_5 : f32 to vector<256x128xf32>
    %6 = arith.mulf %5, %4 : vector<256x128xf32>
    %7 = arith.maximumf %4, %6 : vector<256x128xf32>
    %c0_6 = arith.constant 0 : index
    %c0_7 = arith.constant 0 : index
    %8 = vector.load %arg4[%c0_6, %c0_7] : memref<128x128xf32, #tpu.memory_space<vmem>>, vector<128x128xf32>
    %cst_8 = arith.constant dense<0.000000e+00> : vector<256x128xf32>
    %9 = tpu.matmul %7, %8, %cst_8 {dimension_numbers = #tpu.dot_dimension_numbers<[1], [0], [0], [1], [0, 0, 1, 1], [], []>} : vector<256x128xf32>, vector<128x128xf32>, vector<256x128xf32> -> vector<256x128xf32>
    %c0_9 = arith.constant 0 : index
    %c0_10 = arith.constant 0 : index
    %10 = vector.load %arg5[%c0_9, %c0_10] : memref<1x128xf32, #tpu.memory_space<vmem>>, vector<1x128xf32>
    %11 = vector.broadcast %10 : vector<1x128xf32> to vector<256x128xf32>
    %12 = arith.addf %9, %11 : vector<256x128xf32>
    %cst_11 = arith.constant 0.00999999977 : f32
    %13 = vector.broadcast %cst_11 : f32 to vector<256x128xf32>
    %14 = arith.mulf %13, %12 : vector<256x128xf32>
    %15 = arith.maximumf %12, %14 : vector<256x128xf32>
    %c0_12 = arith.constant 0 : index
    %c0_13 = arith.constant 0 : index
    %16 = vector.load %arg6[%c0_12, %c0_13] : memref<1x128xf32, #tpu.memory_space<vmem>>, vector<1x128xf32>
    %cst_14 = arith.constant dense<0.000000e+00> : vector<1x256xf32>
    %17 = tpu.matmul %16, %15, %cst_14 {dimension_numbers = #tpu.dot_dimension_numbers<[1], [1], [0], [0], [0, 0, 1, 0], [], []>} : vector<1x128xf32>, vector<256x128xf32>, vector<1x256xf32> -> vector<1x256xf32>
    %c0_15 = arith.constant 0 : index
    %c0_16 = arith.constant 0 : index
    %18 = vector.load %arg7[%c0_15, %c0_16] : memref<1x1xf32, #tpu.memory_space<vmem>>, vector<1x1xf32>
    %19 = vector.broadcast %18 : vector<1x1xf32> to vector<1x256xf32>
    %20 = arith.addf %17, %19 : vector<1x256xf32>
    %21 = arith.negf %20 : vector<1x256xf32>
    %22 = math.exp %21 : vector<1x256xf32>
    %cst_17 = arith.constant 1.000000e+00 : f32
    %23 = vector.broadcast %cst_17 : f32 to vector<1x256xf32>
    %24 = arith.addf %23, %22 : vector<1x256xf32>
    %25 = arith.divf %23, %24 : vector<1x256xf32>
    %c0_18 = arith.constant 0 : index
    %c0_19 = arith.constant 0 : index
    %26 = vector.load %arg8[%c0_18, %c0_19] : memref<1x256xf32, #tpu.memory_space<vmem>>, vector<1x256xf32>
    tpu.vector_store %arg8[%c0_18, %c0_19], %25 {strides = array<i32>} : memref<1x256xf32, #tpu.memory_space<vmem>>, vector<1x256xf32>,
    return
  }
  func.func @transform_0(%arg0: i32) -> (i32, i32) {
    %c0_i32 = arith.constant 0 : i32
    %c0_i32_0 = arith.constant 0 : i32
    return %arg0, %c0_i32 : i32, i32
  }
  func.func @transform_1(%arg0: i32) -> (i32, i32) {
    %c0_i32 = arith.constant 0 : i32
    %c0_i32_0 = arith.constant 0 : i32
    return %arg0, %c0_i32 : i32, i32
  }
  func.func @transform_2(%arg0: i32) -> (i32, i32) {
    %c0_i32 = arith.constant 0 : i32
    %c0_i32_0 = arith.constant 0 : i32
    %c0_i32_1 = arith.constant 0 : i32
    return %c0_i32, %c0_i32_0 : i32, i32
  }
  func.func @transform_3(%arg0: i32) -> (i32, i32) {
    %c0_i32 = arith.constant 0 : i32
    %c0_i32_0 = arith.constant 0 : i32
    %c0_i32_1 = arith.constant 0 : i32
    return %c0_i32, %c0_i32_0 : i32, i32
  }
  func.func @transform_4(%arg0: i32) -> (i32, i32) {
    %c0_i32 = arith.constant 0 : i32
    %c0_i32_0 = arith.constant 0 : i32
    %c0_i32_1 = arith.constant 0 : i32
    return %c0_i32, %c0_i32_0 : i32, i32
  }
  func.func @transform_5(%arg0: i32) -> (i32, i32) {
    %c0_i32 = arith.constant 0 : i32
    %c0_i32_0 = arith.constant 0 : i32
    %c0_i32_1 = arith.constant 0 : i32
    return %c0_i32, %c0_i32_0 : i32, i32
  }
  func.func @transform_6(%arg0: i32) -> (i32, i32) {
    %c0_i32 = arith.constant 0 : i32
    %c0_i32_0 = arith.constant 0 : i32
    %c0_i32_1 = arith.constant 0 : i32
    return %c0_i32, %c0_i32_0 : i32, i32
  }
  func.func @transform_7(%arg0: i32) -> (i32, i32) {
    %c0_i32 = arith.constant 0 : i32
    %c0_i32_0 = arith.constant 0 : i32
    return %c0_i32, %arg0 : i32, i32
  }
}

</mosaic_0001>

<bundles_post_ra>
// kernel: tpu_custom_call.1
= control target key start
LH: loop header
LB: loop body
LE: loop exit
PB: predicated region body
PF: predicated region fallthrough
CT: control target
= control target key end

     0   :  { %s2196_s0 = inlined_call_operand.vmem [shape: f32[512,16], index: 0, kind: input, shape index: {}]   ;;  %s2197_s1 = inlined_call_operand.vmem [shape: f32[512,128], index: 1, kind: input, shape index: {}]   ;;  %s2198_s2 = inlined_call_operand.vmem [shape: f32[16,128], index: 2, kind: input, shape index: {}]   ;;  %s2199_s3 = inlined_call_operand.hbm [shape: f32[128,128], index: 3, kind: input, shape index: {}]   ;;  %s2200_s4 = inlined_call_operand.vmem [shape: f32[1,128], index: 4, kind: input, shape index: {}]   ;;  %s2201_s5 = inlined_call_operand.vmem [shape: f32[1,128], index: 5, kind: input, shape index: {}]   ;;  %s2202_s6 = inlined_call_operand.<no memory space> [shape: f32[1,1], index: 6, kind: input, shape index: {}]   ;;  %s2203_s7 = inlined_call_operand.hbm [shape: f32[1,512], index: 7, kind: output, shape index: {}]  }
   0x1   :  { %v12_v0 = vstv %s2202_s6 }
   0x2   :  { %13 = vst [vmem:[#allocation2] sm:$0x1] %v12_v0 }
   0x3   :  { %14 = vsyncpa [#allocation4], 0 }
   0x4   :  { %15 = vsyncpa [#allocation5], 0 }
   0x5   :  { %17 = vsyncpa [#allocation5 + $0x1], 0  ;;  %s1874_s26 = smov 0   ;;  %s1876_s27 = smov 0  }
   0x6   :  { %s1878_s28 = smov 0   ;;  %s1880_s29 = smov 0  }
   0x7 LB: > { %s1895_s6 = sadd.s32 4294967295, %s1823_s29   ;;  %s1298_s30 = sadd.s32 4294967294, %s1823_s29   ;;  %s1823_s29 = sphi %s1880_s29, %s2219_s29   ;;  %s1819_s28 = sphi %s1878_s28, %s2218_s28   ;;  %s1815_s27 = sphi %s1876_s27, %s2217_s27   ;;  %s1811_s26 = sphi %s1874_s26, %s2216_s26  }
   0x8   : > { %s1899_s8 = sadd.s32 1, %s1823_s29   ;;  %s187_s9 = sadd.s32 1, %s1819_s28 }
   0x9   : > { %s184_s10 = ssub.s32 %s1823_s29, %s1899_s8  ;;  %p197_p0 = scmp.ne.s32.totalorder %s1819_s28, %s1815_s27 }
   0xa   : > { %p185_p1 = scmp.eq.s32.totalorder %s184_s10, 0  ;;  %p198_p2 = scmp.eq.s32.totalorder %s1895_s6, 1 }
   0xb   : > { %p203_p3 = scmp.ne.s32.totalorder %s1815_s27, %s1811_s26  ;;  %p204_p4 = scmp.eq.s32.totalorder %s1298_s30, 1 }
   0xc   : > { %s1910_s11 = scalar_select %p185_p1, %s1819_s28, %s187_s9  }
   0xd   : > { %p1912_p5 = por %p198_p2, %p197_p0  ;;  %p1916_p6 = por %p204_p4, %p203_p3 }
   0xe   : > { %p1299_p7 = scmp.ge.s32.totalorder %s1823_s29, 1  ;;  %p211_p8 = scmp.lt.s32.totalorder %s1823_s29, 3 }
   0xf   : > { %s2207_s12 = scalar_select %p1912_p5, 1, 0 }
  0x10   : > { %s2208_s13 = scalar_select %p1916_p6, 1, 0 }
  0x11   : > { %p2204_p9 = scmp.eq.s32.totalorder %s1895_s6, 0  ;;  %p1923_p10 = pnand %p1299_p7, %p211_p8 }
  0x12   : > { %s1825_s15 = smov [#allocation3]   ;;  %s1729_s20 = scalar_lea.hbm %s2199_s3, 2048 }
  0x13   : > { %s2209_s14 = scalar_select %p1923_p10, 1, 0 }
  0x14   : > { %s226_s16 = sshll.u32 %s1825_s15, 4  ;;  %p1672_p11 = pneg %p1923_p10  ;;  %s227_s16 = int_to_ptr.vmem [resolvable:$true] %s226_s16 }
  0x15   : > { %p1730_p13 = scmp.ne.s32.totalorder %s2199_s3, %s1729_s20  ;;  %p1736_p3 = scmp.lt.u32.totalorder %s1729_s20, %s2199_s3 }
  0x16   : > { %p1931_p12 = pnand %p2204_p9, %p1672_p11 }
  0x18   : > { %p1731_p0 = pneg %p1931_p12 }
  0x1a   : > { %p1732_p1 = pnand %p1731_p0, %p1730_p13 }
  0x1c   : > { %p1733_p2 = pneg %p1732_p1 }
  0x1e   : > { %p1738_p4 = pnand %p1736_p3, %p1733_p2 }
  0x20   : > { %1741 = shalt.err (!%p1738_p4)
}
  0x21   : > { %s1742_s25 = scalar_lea.vmem %s227_s16, 2048  ;;  %p1750_p9 = scmp.lt.s32.totalorder %s227_s16, %s227_s16 }
  0x22   : > { %p1743_p7 = scmp.ne.s32.totalorder %s227_s16, %s1742_s25  ;;  %p1751_p6 = scmp.lt.s32.totalorder %s1742_s25, %s1742_s25 }
  0x24   : > { %p1745_p8 = pnand %p1743_p7, %p1731_p0  ;;  %p1752_p5 = por %p1751_p6, %p1750_p9 }
  0x26   : > { %p1746_p11 = pneg %p1745_p8 }
  0x28   : > { %p1753_p10 = pnand %p1752_p5, %p1746_p11 }
  0x2a   : > { %1756 = shalt.err (!%p1753_p10)
}
  0x2b   : > { %s1826_s30 = smov 128   ;;  %s1827_s9 = smov 8  }
  0x2c   : > { %1675 = dma.hbm_to_vmem [thread:$0]  (!%p1931_p12), %s2199_s3, 2048, %s227_s16, [#allocation4], %s1826_s30, %s1826_s30, %s1827_s9  }
  0x2d   : > { %p2211_p13 = scmp.ne.s32.totalorder %s2209_s14, 0 }
  0x2e   : > { %p2212_p1 = scmp.eq.s32.totalorder (!%p2211_p13), %s1895_s6, 0 }
  0x2f   : > { %269 = sbr.rel (%p2211_p13) target bundleno = 862 (0x35e), region = 48 }
  0x36   : > { %1802 = dma.done.wait (%p2212_p1), [#allocation4], 2048   ;;  %p2213_p0 = pmov %p2212_p1 }
  0x37   : > { %s1958_s18 = sshll.u32 %s1895_s6, 5  ;;  %vm385_vm0 = vcmask 130048   ;;  %v351_v1 = vld [vmem:[%s2198_s2] sm:$0xff]  ;;  %v352_v2 = vld [vmem:[%s2198_s2 + $0x8] sm:$0xff]  ;;  %v773_v13 = vld [vmem:[#allocation3 + $0x10] sm:$0xff]  ;;  %p2214_p9 = scmp.ne.s32.totalorder %s2207_s12, 0 }
  0x38   : > { %1804 = vsyncadd (%p2213_p0), [#allocation4], 4294965248  ;;  %p307_p5 = scmp.lt.s32.totalorder %s1958_s18, 63  ;;  %v1598_v4 = vpack.c.bf16 %v352_v2, %v351_v1  ;;  %v771_v9 = vld [vmem:[#allocation3] sm:$0xff]  ;;  %v772_v10 = vld [vmem:[#allocation3 + $0x8] sm:$0xff]  ;;  %s2154_s6 = scalar_lea.hbm %s2203_s7, %s1958_s18 }
  0x39   : > { %v1602_v12 = vpack.c.bf16 %v772_v10, %v771_v9  ;;  %v774_v14 = vld [vmem:[#allocation3 + $0x18] sm:$0xff]  ;;  %v775_v17 = vld [vmem:[#allocation3 + $0x20] sm:$0xff]  ;;  %v776_v18 = vld [vmem:[#allocation3 + $0x28] sm:$0xff]  ;;  %s1830_s25 = smov [#allocation6]  }
  0x3a   : > { %s1962_s17 = scalar_select %p307_p5, %s1958_s18, 63  ;;  %1599 = vmatprep.subr.bf16.mxu0 %v1598_v4  ;;  %v1606_v16 = vpack.c.bf16 %v774_v14, %v773_v13  ;;  %v1610_v20 = vpack.c.bf16 %v776_v18, %v775_v17  ;;  %v777_v22 = vld [vmem:[#allocation3 + $0x30] sm:$0xff]  ;;  %v778_v23 = vld [vmem:[#allocation3 + $0x38] sm:$0xff]  ;;  %v779_v27 = vld [vmem:[#allocation3 + $0x40] sm:$0xff] }
  0x3b   : > { %1601 = vmatpush3.bf16.msra.mxu0 %v1598_v4  ;;  %1603 = vmatprep.subr.bf16.mxu1 %v1602_v12  ;;  %v1614_v25 = vpack.c.bf16 %v778_v23, %v777_v22  ;;  %v780_v28 = vld [vmem:[#allocation3 + $0x48] sm:$0xff]  ;;  %v781_v32 = vld [vmem:[#allocation3 + $0x50] sm:$0xff]  ;;  %v782_v33 = vld [vmem:[#allocation3 + $0x58] sm:$0xff] }
  0x3c   : > { %s1306_s16 = sshll.u32 %s1962_s17, 3  ;;  %1605 = vmatpush3.bf16.msra.mxu1 %v1602_v12  ;;  %v1618_v30 = vpack.c.bf16 %v780_v28, %v779_v27  ;;  %v1622_v35 = vpack.c.bf16 %v782_v33, %v781_v32  ;;  %v783_v54 = vld [vmem:[#allocation3 + $0x60] sm:$0xff]  ;;  %v784_v55 = vld [vmem:[#allocation3 + $0x68] sm:$0xff]  ;;  %v785_v57 = vld [vmem:[#allocation3 + $0x70] sm:$0xff] }
  0x3d   : > { %s1970_s20 = scalar_lea.vmem %s2196_s0, %s1306_s16  ;;  %1607 = vmatprep.subr.bf16.mxu1 %v1606_v16  ;;  %v1626_v56 = vpack.c.bf16 %v784_v55, %v783_v54  ;;  %v786_v58 = vld [vmem:[#allocation3 + $0x78] sm:$0xff]  ;;  %s2047_s30 = scalar_lea.vmem %s2197_s1, %s1306_s16 }
  0x3e   : > { %v319_v3 = vld [vmem:[%s1970_s20] sm:$0xff]  ;;  %v320_v5 = vld [vmem:[%s1970_s20 + $0x8] sm:$0xff]  ;;  %v321_v6 = vld [vmem:[%s1970_s20 + $0x10] sm:$0xff]  ;;  %v1630_v59 = vpack.c.bf16 %v786_v58, %v785_v57  ;;  %s303_s16 = sand.u32 1, %s1815_s27  }
  0x3f   : > { %1470 = vmatprep.mubr.msk.f32.mxu0 %vm385_vm0, %v319_v3  ;;  %v322_v7 = vld [vmem:[%s1970_s20 + $0x18] sm:$0xff]  ;;  %v323_v8 = vld [vmem:[%s1970_s20 + $0x20] sm:$0xff]  ;;  %v324_v11 = vld [vmem:[%s1970_s20 + $0x28] sm:$0xff]  ;;  %s1304_s14 = sshll.u32 %s303_s16, 1  ;;  %s1201_s23 = scalar_lea.sflag [#allocation5], %s303_s16 }
  0x40   : > { %1471 = vmatmul.mubr.msk.f32.vlgmr.msra.gmra.mrb[0].mxu0 %vm385_vm0, %v320_v5  ;;  %v325_v15 = vld [vmem:[%s1970_s20 + $0x30] sm:$0xff]  ;;  %v326_v19 = vld [vmem:[%s1970_s20 + $0x38] sm:$0xff]  ;;  %v327_v21 = vld [vmem:[%s1970_s20 + $0x40] sm:$0xff]  ;;  %1609 = vmatpush3.bf16.msra.mxu1 %v1606_v16  ;;  %s305_s19 = scalar_lea.vmem [#allocation6], %s1304_s14 }
  0x41   : > { %1473 = vmatprep.mubr.msk.f32.mxu0 %vm385_vm0, %v321_v6  ;;  %v328_v24 = vld [vmem:[%s1970_s20 + $0x48] sm:$0xff]  ;;  %1611 = vmatprep.subr.bf16.mxu1 %v1610_v20  ;;  %v329_v26 = vld [vmem:[%s1970_s20 + $0x50] sm:$0xff]  ;;  %v330_v29 = vld [vmem:[%s1970_s20 + $0x58] sm:$0xff] }
  0x42   : > { %v331_v31 = vld [vmem:[%s1970_s20 + $0x60] sm:$0xff]  ;;  %v332_v34 = vld [vmem:[%s1970_s20 + $0x68] sm:$0xff]  ;;  %v333_v36 = vld [vmem:[%s1970_s20 + $0x70] sm:$0xff] }
  0x43   : > { %v334_v37 = vld [vmem:[%s1970_s20 + $0x78] sm:$0xff]  ;;  %v335_v38 = vld [vmem:[%s1970_s20 + $0x80] sm:$0xff]  ;;  %v336_v39 = vld [vmem:[%s1970_s20 + $0x88] sm:$0xff] }
  0x44   : > { %1474 = vmatmul.mubr.msk.f32.gmra.mrb[2].mxu0 %vm385_vm0, %v322_v7  ;;  %1613 = vmatpush3.bf16.msra.mxu1 %v1610_v20  ;;  %v337_v40 = vld [vmem:[%s1970_s20 + $0x90] sm:$0xff]  ;;  %v338_v41 = vld [vmem:[%s1970_s20 + $0x98] sm:$0xff]  ;;  %v339_v42 = vld [vmem:[%s1970_s20 + $0xa0] sm:$0xff] }
  0x45   : > { %1476 = vmatprep.mubr.msk.f32.mxu0 %vm385_vm0, %v323_v8  ;;  %1615 = vmatprep.subr.bf16.mxu1 %v1614_v25  ;;  %v340_v43 = vld [vmem:[%s1970_s20 + $0xa8] sm:$0xff]  ;;  %v341_v44 = vld [vmem:[%s1970_s20 + $0xb0] sm:$0xff]  ;;  %v342_v45 = vld [vmem:[%s1970_s20 + $0xb8] sm:$0xff] }
  0x46   : > { %v343_v46 = vld [vmem:[%s1970_s20 + $0xc0] sm:$0xff]  ;;  %v344_v47 = vld [vmem:[%s1970_s20 + $0xc8] sm:$0xff]  ;;  %v345_v48 = vld [vmem:[%s1970_s20 + $0xd0] sm:$0xff] }
  0x47   : > { %v346_v49 = vld [vmem:[%s1970_s20 + $0xd8] sm:$0xff]  ;;  %v347_v50 = vld [vmem:[%s1970_s20 + $0xe0] sm:$0xff]  ;;  %v348_v51 = vld [vmem:[%s1970_s20 + $0xe8] sm:$0xff] }
  0x48   : > { %1477 = vmatmul.mubr.msk.f32.gmra.mrb[4].mxu0 %vm385_vm0, %v324_v11  ;;  %1617 = vmatpush3.bf16.msra.mxu1 %v1614_v25  ;;  %v349_v52 = vld [vmem:[%s1970_s20 + $0xf0] sm:$0xff]  ;;  %v350_v53 = vld [vmem:[%s1970_s20 + $0xf8] sm:$0xff]  ;;  %v354_v60 = vld [vmem:[%s2047_s30 + $0x8] sm:$0xff]  ;;  %s1215_s20 = sshll.u32 %s305_s19, 4  ;;  %s2156_s20 = int_to_ptr.vmem [resolvable:$true] %s1215_s20 }
  0x49   : > { %1479 = vmatprep.mubr.msk.f32.mxu0 %vm385_vm0, %v325_v15  ;;  %1619 = vmatprep.subr.bf16.mxu1 %v1618_v30  ;;  %v353_v61 = vld [vmem:[%s2047_s30] sm:$0xff]  ;;  %v356_v2 = vld [vmem:[%s2047_s30 + $0x18] sm:$0xff]  ;;  %v355_v4 = vld [vmem:[%s2047_s30 + $0x10] sm:$0xff]  ;;  %s1757_s24 = scalar_lea.vmem %s2156_s20, 32 }
  0x4a   : > { %v358_v10 = vld [vmem:[%s2047_s30 + $0x28] sm:$0xff]  ;;  %v357_v14 = vld [vmem:[%s2047_s30 + $0x20] sm:$0xff]  ;;  %p1758_p6 = scmp.ne.s32.totalorder %s2156_s20, %s1757_s24 }
  0x4b   : > { %v365_v54 = vld [vmem:[%s2047_s30 + $0x60] sm:$0xff] }
  0x4c   : > { %1480 = vmatmul.mubr.msk.f32.gmra.mrb[6].mxu0 %vm385_vm0, %v326_v19  ;;  %1621 = vmatpush3.bf16.msra.mxu1 %v1618_v30  ;;  %p1759_p10 = pnand %p1758_p6, %p2214_p9 }
  0x4d   : > { %1482 = vmatprep.mubr.msk.f32.mxu0 %vm385_vm0, %v327_v21  ;;  %1623 = vmatprep.subr.bf16.mxu1 %v1622_v35  ;;  %v360_v21 = vld [vmem:[%s2047_s30 + $0x38] sm:$0xff] }
  0x4e   : > { %p1760_p12 = pneg %p1759_p10 }
  0x50   : > { %1483 = vmatmul.mubr.msk.f32.gmra.mrb[8].mxu0 %vm385_vm0, %v328_v24  ;;  %1625 = vmatpush3.bf16.msra.mxu1 %v1622_v35  ;;  %v359_v24 = vld [vmem:[%s2047_s30 + $0x30] sm:$0xff] }
  0x51   : > { %1485 = vmatprep.mubr.msk.f32.mxu0 %vm385_vm0, %v329_v26  ;;  %1627 = vmatprep.subr.bf16.mxu1 %v1626_v56 }
  0x54   : > { %1486 = vmatmul.mubr.msk.f32.gmra.mrb[10].mxu0 %vm385_vm0, %v330_v29  ;;  %1629 = vmatpush3.bf16.msra.mxu1 %v1626_v56 }
  0x55   : > { %1488 = vmatprep.mubr.msk.f32.mxu0 %vm385_vm0, %v331_v31  ;;  %1631 = vmatprep.subr.bf16.mxu1 %v1630_v59  ;;  %v362_v31 = vld [vmem:[%s2047_s30 + $0x48] sm:$0xff] }
  0x58   : > { %1489 = vmatmul.mubr.msk.f32.gmra.mrb[12].mxu0 %vm385_vm0, %v332_v34  ;;  %1633 = vmatpush3.bf16.msra.mxu1 %v1630_v59  ;;  %v361_v34 = vld [vmem:[%s2047_s30 + $0x40] sm:$0xff] }
  0x59   : > { %1491 = vmatprep.mubr.msk.f32.mxu0 %vm385_vm0, %v333_v36 }
  0x5c   : > { %1492 = vmatmul.mubr.msk.f32.gmra.mrb[14].mxu0 %vm385_vm0, %v334_v37 }
  0x5d   : > { %1494 = vmatprep.mubr.msk.f32.mxu0 %vm385_vm0, %v335_v38 }
  0x60   : > { %1495 = vmatmul.mubr.msk.f32.gmra.mrb[16].mxu0 %vm385_vm0, %v336_v39 }
  0x61   : > { %1497 = vmatprep.mubr.msk.f32.mxu0 %vm385_vm0, %v337_v40 }
  0x64   : > { %1498 = vmatmul.mubr.msk.f32.gmra.mrb[18].mxu0 %vm385_vm0, %v338_v41  ;;  %v364_v41 = vld [vmem:[%s2047_s30 + $0x58] sm:$0xff] }
  0x65   : > { %1500 = vmatprep.mubr.msk.f32.mxu0 %vm385_vm0, %v339_v42 }
  0x68   : > { %1501 = vmatmul.mubr.msk.f32.gmra.mrb[20].mxu0 %vm385_vm0, %v340_v43 }
  0x69   : > { %1503 = vmatprep.mubr.msk.f32.mxu0 %vm385_vm0, %v341_v44  ;;  %v363_v44 = vld [vmem:[%s2047_s30 + $0x50] sm:$0xff] }
  0x6c   : > { %1504 = vmatmul.mubr.msk.f32.gmra.mrb[22].mxu0 %vm385_vm0, %v342_v45 }
  0x6d   : > { %1506 = vmatprep.mubr.msk.f32.mxu0 %vm385_vm0, %v343_v46 }
  0x70   : > { %1507 = vmatmul.mubr.msk.f32.gmra.mrb[24].mxu0 %vm385_vm0, %v344_v47 }
  0x71   : > { %1509 = vmatprep.mubr.msk.f32.mxu0 %vm385_vm0, %v345_v48 }
  0x74   : > { %1510 = vmatmul.mubr.msk.f32.gmra.mrb[26].mxu0 %vm385_vm0, %v346_v49 }
  0x75   : > { %1512 = vmatprep.mubr.msk.f32.mxu0 %vm385_vm0, %v347_v50 }
  0x78   : > { %1513 = vmatmul.mubr.msk.f32.gmra.mrb[28].mxu0 %vm385_vm0, %v348_v51  ;;  %v366_v51 = vld [vmem:[%s2047_s30 + $0x68] sm:$0xff] }
  0x79   : > { %1515 = vmatprep.mubr.msk.f32.mxu0 %vm385_vm0, %v349_v52 }
  0x7c   : > { %1516 = vmatmul.mubr.msk.f32.gmra.mrb[30].mxu0 %vm385_vm0, %v350_v53 }
 0x113   : > { %v1472_v62 = vpop.f32.mrb[0].mxu0 }
 0x114   : > { %v554_v63 = vadd.f32 %v1472_v62, %v354_v60  ;;  %v548_v0 = vpop.f32.mrb[1].mxu0 }
 0x115   : > { %v549_v1 = vadd.f32 %v548_v0, %v353_v61  ;;  %v368_v61 = vld [vmem:[%s2047_s30 + $0x78] sm:$0xff]  ;;  %v367_v0 = vld [vmem:[%s2047_s30 + $0x70] sm:$0xff] }
 0x116   : > { %v708_v3 = vmul.f32 0.01, %v554_v63 }
 0x117   : > { %v1475_v5 = vpop.f32.mrb[2].mxu0  ;;  %v707_v6 = vmul.f32 0.01, %v549_v1 }
 0x118   : > { %v564_v7 = vadd.f32 %v1475_v5, %v356_v2  ;;  %v558_v8 = vpop.f32.mrb[3].mxu0  ;;  %v740_v12 = vmax.f32 %v554_v63, %v708_v3 }
 0x119   : > { %v559_v9 = vadd.f32 %v558_v8, %v355_v4  ;;  %v739_v11 = vmax.f32 %v549_v1, %v707_v6 }
 0x11a   : > { %v710_v13 = vmul.f32 0.01, %v564_v7 }
 0x11b   : > { %v709_v15 = vmul.f32 0.01, %v559_v9  ;;  %v1478_v16 = vpop.f32.mrb[4].mxu0  ;;  %1550 = vmatprep.mubr.f32.mxu1 %v739_v11 }
 0x11c   : > { %v574_v17 = vadd.f32 %v1478_v16, %v358_v10  ;;  %v568_v18 = vpop.f32.mrb[5].mxu0  ;;  %1551 = vmatmul.mubr.f32.vlgmr.msra.gmra.mrb[0].mxu1 %v740_v12  ;;  %v742_v22 = vmax.f32 %v564_v7, %v710_v13  ;;  %v370_v7 = vld [vmem:[%s2047_s30 + $0x88] sm:$0xff]  ;;  %v369_v10 = vld [vmem:[%s2047_s30 + $0x80] sm:$0xff] }
 0x11d   : > { %v741_v19 = vmax.f32 %v559_v9, %v709_v15  ;;  %v569_v20 = vadd.f32 %v568_v18, %v357_v14 }
 0x11e   : > { %v712_v23 = vmul.f32 0.01, %v574_v17 }
 0x11f   : > { %v711_v25 = vmul.f32 0.01, %v569_v20  ;;  %v1481_v26 = vpop.f32.mrb[6].mxu0  ;;  %1553 = vmatprep.mubr.f32.mxu1 %v741_v19 }
 0x120   : > { %v584_v27 = vadd.f32 %v1481_v26, %v360_v21  ;;  %v578_v28 = vpop.f32.mrb[7].mxu0  ;;  %1554 = vmatmul.mubr.f32.gmra.mrb[2].mxu1 %v742_v22  ;;  %v744_v32 = vmax.f32 %v574_v17, %v712_v23  ;;  %v372_v17 = vld [vmem:[%s2047_s30 + $0x98] sm:$0xff] }
 0x121   : > { %v743_v29 = vmax.f32 %v569_v20, %v711_v25  ;;  %v579_v30 = vadd.f32 %v578_v28, %v359_v24  ;;  %v371_v20 = vld [vmem:[%s2047_s30 + $0x90] sm:$0xff] }
 0x122   : > { %v714_v33 = vmul.f32 0.01, %v584_v27 }
 0x123   : > { %v713_v35 = vmul.f32 0.01, %v579_v30  ;;  %v1484_v36 = vpop.f32.mrb[8].mxu0  ;;  %1556 = vmatprep.mubr.f32.mxu1 %v743_v29 }
 0x124   : > { %v594_v37 = vadd.f32 %v1484_v36, %v362_v31  ;;  %v588_v38 = vpop.f32.mrb[9].mxu0  ;;  %1557 = vmatmul.mubr.f32.gmra.mrb[4].mxu1 %v744_v32  ;;  %v746_v42 = vmax.f32 %v584_v27, %v714_v33  ;;  %v374_v27 = vld [vmem:[%s2047_s30 + $0xa8] sm:$0xff] }
 0x125   : > { %v745_v39 = vmax.f32 %v579_v30, %v713_v35  ;;  %v589_v40 = vadd.f32 %v588_v38, %v361_v34  ;;  %v373_v30 = vld [vmem:[%s2047_s30 + $0xa0] sm:$0xff]  ;;  %v376_v38 = vld [vmem:[%s2047_s30 + $0xb8] sm:$0xff] }
 0x126   : > { %v716_v43 = vmul.f32 0.01, %v594_v37 }
 0x127   : > { %v715_v45 = vmul.f32 0.01, %v589_v40  ;;  %v1487_v46 = vpop.f32.mrb[10].mxu0  ;;  %1559 = vmatprep.mubr.f32.mxu1 %v745_v39 }
 0x128   : > { %v604_v47 = vadd.f32 %v1487_v46, %v364_v41  ;;  %v598_v48 = vpop.f32.mrb[11].mxu0  ;;  %1560 = vmatmul.mubr.f32.gmra.mrb[6].mxu1 %v746_v42  ;;  %v748_v52 = vmax.f32 %v594_v37, %v716_v43 }
 0x129   : > { %v747_v49 = vmax.f32 %v589_v40, %v715_v45  ;;  %v599_v50 = vadd.f32 %v598_v48, %v363_v44  ;;  %v375_v40 = vld [vmem:[%s2047_s30 + $0xb0] sm:$0xff]  ;;  %v378_v48 = vld [vmem:[%s2047_s30 + $0xc8] sm:$0xff] }
 0x12a   : > { %v718_v53 = vmul.f32 0.01, %v604_v47 }
 0x12b   : > { %v717_v55 = vmul.f32 0.01, %v599_v50  ;;  %v1490_v56 = vpop.f32.mrb[12].mxu0  ;;  %1562 = vmatprep.mubr.f32.mxu1 %v747_v49 }
 0x12c   : > { %v614_v57 = vadd.f32 %v1490_v56, %v366_v51  ;;  %v608_v58 = vpop.f32.mrb[13].mxu0  ;;  %1563 = vmatmul.mubr.f32.gmra.mrb[8].mxu1 %v748_v52  ;;  %v750_v62 = vmax.f32 %v604_v47, %v718_v53 }
 0x12d   : > { %v749_v59 = vmax.f32 %v599_v50, %v717_v55  ;;  %v609_v60 = vadd.f32 %v608_v58, %v365_v54  ;;  %v377_v50 = vld [vmem:[%s2047_s30 + $0xc0] sm:$0xff]  ;;  %v380_v58 = vld [vmem:[%s2047_s30 + $0xd8] sm:$0xff] }
 0x12e   : > { %v720_v63 = vmul.f32 0.01, %v614_v57 }
 0x12f   : > { %v719_v1 = vmul.f32 0.01, %v609_v60  ;;  %v1493_v2 = vpop.f32.mrb[14].mxu0  ;;  %1565 = vmatprep.mubr.f32.mxu1 %v749_v59 }
 0x130   : > { %v624_v3 = vadd.f32 %v1493_v2, %v368_v61  ;;  %v618_v4 = vpop.f32.mrb[15].mxu0  ;;  %1566 = vmatmul.mubr.f32.gmra.mrb[10].mxu1 %v750_v62  ;;  %v752_v8 = vmax.f32 %v614_v57, %v720_v63 }
 0x131   : > { %v751_v5 = vmax.f32 %v609_v60, %v719_v1  ;;  %v619_v6 = vadd.f32 %v618_v4, %v367_v0  ;;  %v379_v60 = vld [vmem:[%s2047_s30 + $0xd0] sm:$0xff]  ;;  %v382_v4 = vld [vmem:[%s2047_s30 + $0xe8] sm:$0xff] }
 0x132   : > { %v722_v9 = vmul.f32 0.01, %v624_v3 }
 0x133   : > { %v721_v11 = vmul.f32 0.01, %v619_v6  ;;  %v1496_v12 = vpop.f32.mrb[16].mxu0  ;;  %1568 = vmatprep.mubr.f32.mxu1 %v751_v5 }
 0x134   : > { %v634_v13 = vadd.f32 %v1496_v12, %v370_v7  ;;  %v628_v14 = vpop.f32.mrb[17].mxu0  ;;  %1569 = vmatmul.mubr.f32.gmra.mrb[12].mxu1 %v752_v8  ;;  %v754_v18 = vmax.f32 %v624_v3, %v722_v9 }
 0x135   : > { %v753_v15 = vmax.f32 %v619_v6, %v721_v11  ;;  %v629_v16 = vadd.f32 %v628_v14, %v369_v10  ;;  %v381_v6 = vld [vmem:[%s2047_s30 + $0xe0] sm:$0xff]  ;;  %v384_v14 = vld [vmem:[%s2047_s30 + $0xf8] sm:$0xff] }
 0x136   : > { %v724_v19 = vmul.f32 0.01, %v634_v13 }
 0x137   : > { %v723_v21 = vmul.f32 0.01, %v629_v16  ;;  %v1499_v22 = vpop.f32.mrb[18].mxu0  ;;  %1571 = vmatprep.mubr.f32.mxu1 %v753_v15 }
 0x138   : > { %v644_v23 = vadd.f32 %v1499_v22, %v372_v17  ;;  %v638_v24 = vpop.f32.mrb[19].mxu0  ;;  %1572 = vmatmul.mubr.f32.gmra.mrb[14].mxu1 %v754_v18  ;;  %v756_v28 = vmax.f32 %v634_v13, %v724_v19 }
 0x139   : > { %v755_v25 = vmax.f32 %v629_v16, %v723_v21  ;;  %v639_v26 = vadd.f32 %v638_v24, %v371_v20  ;;  %v383_v16 = vld [vmem:[%s2047_s30 + $0xf0] sm:$0xff]  ;;  %s1761_s30 = sshll.u32 %s1830_s25, 4  ;;  %s1762_s30 = int_to_ptr.vmem [resolvable:$false] %s1761_s30 }
 0x13a   : > { %v726_v29 = vmul.f32 0.01, %v644_v23  ;;  %s1763_s9 = scalar_lea.vmem %s1762_s30, 64  ;;  %p1764_p2 = scmp.lt.s32.totalorder %s2156_s20, %s1762_s30 }
 0x13b   : > { %v725_v31 = vmul.f32 0.01, %v639_v26  ;;  %1574 = vmatprep.mubr.f32.mxu1 %v755_v25  ;;  %v1502_v32 = vpop.f32.mrb[20].mxu0  ;;  %p1765_p3 = scmp.lt.s32.totalorder %s1763_s9, %s1757_s24 }
 0x13c   : > { %v758_v33 = vmax.f32 %v644_v23, %v726_v29  ;;  %v654_v34 = vadd.f32 %v1502_v32, %v374_v27  ;;  %1575 = vmatmul.mubr.f32.gmra.mrb[16].mxu1 %v756_v28  ;;  %v648_v35 = vpop.f32.mrb[21].mxu0  ;;  %v2084_v28 = vld [vmem:[%s2201_s5] sm:$0x1] }
 0x13d   : > { %v757_v36 = vmax.f32 %v639_v26, %v725_v31  ;;  %v649_v37 = vadd.f32 %v648_v35, %v373_v30  ;;  %1464 = vmatprep.mubr.f32.mxu0 %v2084_v28  ;;  %v1084_v29 = vld [vmem:[#allocation2] sm:$0x1]  ;;  %v1828_v30 = vmov 0   ;;  %p1766_p4 = por %p1765_p3, %p1764_p2 }
 0x13e   : > { %v728_v39 = vmul.f32 0.01, %v654_v34  ;;  %1720 = vset.pattern.permute.xlu0 %v1828_v30  ;;  %v2090_v31 = vld [vmem:[%s2200_s4] ss:$0 sm:$0xff] }
 0x13f   : > { %v727_v41 = vmul.f32 0.01, %v649_v37  ;;  %1577 = vmatprep.mubr.f32.mxu1 %v757_v36  ;;  %v1505_v42 = vpop.f32.mrb[22].mxu0  ;;  %1087 = vperm.xlu0 %1720, %v1084_v29   ;;  %p1767_p7 = pnand %p1766_p4, %p1760_p12 }
 0x140   : > { %v760_v43 = vmax.f32 %v654_v34, %v728_v39  ;;  %1578 = vmatmul.mubr.f32.gmra.mrb[18].mxu1 %v758_v33  ;;  %v664_v44 = vadd.f32 %v1505_v42, %v376_v38  ;;  %v658_v45 = vpop.f32.mrb[23].mxu0 }
 0x141   : > { %v759_v46 = vmax.f32 %v649_v37, %v727_v41  ;;  %v659_v47 = vadd.f32 %v658_v45, %v375_v40 }
 0x142   : > { %v730_v49 = vmul.f32 0.01, %v664_v44 }
 0x143   : > { %1580 = vmatprep.mubr.f32.mxu1 %v759_v46  ;;  %v729_v51 = vmul.f32 0.01, %v659_v47  ;;  %v1508_v52 = vpop.f32.mrb[24].mxu0 }
 0x144   : > { %v762_v53 = vmax.f32 %v664_v44, %v730_v49  ;;  %1581 = vmatmul.mubr.f32.gmra.mrb[20].mxu1 %v760_v43  ;;  %v674_v54 = vadd.f32 %v1508_v52, %v378_v48  ;;  %v668_v55 = vpop.f32.mrb[25].mxu0 }
 0x145   : > { %v761_v56 = vmax.f32 %v659_v47, %v729_v51  ;;  %v669_v57 = vadd.f32 %v668_v55, %v377_v50 }
 0x146   : > { %v732_v59 = vmul.f32 0.01, %v674_v54 }
 0x147   : > { %1583 = vmatprep.mubr.f32.mxu1 %v761_v56  ;;  %v731_v61 = vmul.f32 0.01, %v669_v57  ;;  %v1511_v62 = vpop.f32.mrb[26].mxu0 }
 0x148   : > { %v764_v63 = vmax.f32 %v674_v54, %v732_v59  ;;  %1584 = vmatmul.mubr.f32.gmra.mrb[22].mxu1 %v762_v53  ;;  %v684_v0 = vadd.f32 %v1511_v62, %v380_v58  ;;  %v678_v1 = vpop.f32.mrb[27].mxu0 }
 0x149   : > { %v763_v2 = vmax.f32 %v669_v57, %v731_v61  ;;  %v679_v3 = vadd.f32 %v678_v1, %v379_v60 }
 0x14a   : > { %v734_v5 = vmul.f32 0.01, %v684_v0 }
 0x14b   : > { %1586 = vmatprep.mubr.f32.mxu1 %v763_v2  ;;  %v733_v7 = vmul.f32 0.01, %v679_v3  ;;  %v1514_v8 = vpop.f32.mrb[28].mxu0 }
 0x14c   : > { %v766_v9 = vmax.f32 %v684_v0, %v734_v5  ;;  %1587 = vmatmul.mubr.f32.gmra.mrb[24].mxu1 %v764_v63  ;;  %v694_v10 = vadd.f32 %v1514_v8, %v382_v4  ;;  %v688_v11 = vpop.f32.mrb[29].mxu0 }
 0x14d   : > { %v765_v12 = vmax.f32 %v679_v3, %v733_v7  ;;  %v689_v13 = vadd.f32 %v688_v11, %v381_v6 }
 0x14e   : > { %v736_v15 = vmul.f32 0.01, %v694_v10 }
 0x14f   : > { %1589 = vmatprep.mubr.f32.mxu1 %v765_v12  ;;  %v735_v17 = vmul.f32 0.01, %v689_v13  ;;  %v1517_v18 = vpop.f32.mrb[30].mxu0 }
 0x150   : > { %v768_v19 = vmax.f32 %v694_v10, %v736_v15  ;;  %1590 = vmatmul.mubr.f32.gmra.mrb[26].mxu1 %v766_v9  ;;  %v704_v20 = vadd.f32 %v1517_v18, %v384_v14  ;;  %v698_v21 = vpop.f32.mrb[31].mxu0 }
 0x151   : > { %v767_v22 = vmax.f32 %v689_v13, %v735_v17  ;;  %v699_v23 = vadd.f32 %v698_v21, %v383_v16 }
 0x152   : > { %v738_v24 = vmul.f32 0.01, %v704_v20 }
 0x153   : > { %1592 = vmatprep.mubr.f32.mxu1 %v767_v22  ;;  %v737_v25 = vmul.f32 0.01, %v699_v23 }
 0x154   : > { %v770_v26 = vmax.f32 %v704_v20, %v738_v24  ;;  %1593 = vmatmul.mubr.f32.gmra.mrb[28].mxu1 %v768_v19 }
 0x155   : > { %v769_v27 = vmax.f32 %v699_v23, %v737_v25 }
 0x157   : > { %1595 = vmatprep.mubr.f32.mxu1 %v769_v27 }
 0x158   : > { %1596 = vmatmul.mubr.f32.gmra.mrb[30].mxu1 %v770_v26 }
 0x1ef   : > { %v1552_v32 = vpop.f32.mrb[0].mxu1 }
 0x1f0   : > { %v866_v33 = vadd.f32 %v1552_v32, %v2090_v31  ;;  %v860_v34 = vpop.f32.mrb[1].mxu1 }
 0x1f1   : > { %v861_v35 = vadd.f32 %v2090_v31, %v860_v34 }
 0x1f2   : > { %v1020_v36 = vmul.f32 0.01, %v866_v33 }
 0x1f3   : > { %v1019_v37 = vmul.f32 0.01, %v861_v35  ;;  %v1555_v38 = vpop.f32.mrb[2].mxu1 }
 0x1f4   : > { %v1052_v39 = vmax.f32 %v866_v33, %v1020_v36  ;;  %v876_v40 = vadd.f32 %v1555_v38, %v2090_v31  ;;  %v870_v41 = vpop.f32.mrb[3].mxu1 }
 0x1f5   : > { %v1051_v42 = vmax.f32 %v861_v35, %v1019_v37  ;;  %v871_v43 = vadd.f32 %v2090_v31, %v870_v41 }
 0x1f6   : > { %v1022_v44 = vmul.f32 0.01, %v876_v40 }
 0x1f7   : > { %v2096_v45 = vpack.c.bf16 %v1052_v39, %v1051_v42  ;;  %v1021_v46 = vmul.f32 0.01, %v871_v43  ;;  %v1558_v47 = vpop.f32.mrb[4].mxu1 }
 0x1f8   : > { %v1054_v48 = vmax.f32 %v876_v40, %v1022_v44  ;;  %v886_v49 = vadd.f32 %v1558_v47, %v2090_v31  ;;  %v880_v50 = vpop.f32.mrb[5].mxu1 }
 0x1f9   : > { %v1053_v51 = vmax.f32 %v871_v43, %v1021_v46  ;;  %v881_v52 = vadd.f32 %v2090_v31, %v880_v50 }
 0x1fa   : > { %v1024_v53 = vmul.f32 0.01, %v886_v49 }
 0x1fb   : > { %v2100_v54 = vpack.c.bf16 %v1054_v48, %v1053_v51  ;;  %v1023_v55 = vmul.f32 0.01, %v881_v52  ;;  %v1561_v56 = vpop.f32.mrb[6].mxu1 }
 0x1fc   : > { %v1056_v57 = vmax.f32 %v886_v49, %v1024_v53  ;;  %v896_v58 = vadd.f32 %v1561_v56, %v2090_v31  ;;  %v890_v59 = vpop.f32.mrb[7].mxu1 }
 0x1fd   : > { %v1055_v60 = vmax.f32 %v881_v52, %v1023_v55  ;;  %v891_v61 = vadd.f32 %v2090_v31, %v890_v59 }
 0x1fe   : > { %v1026_v62 = vmul.f32 0.01, %v896_v58 }
 0x1ff   : > { %v2104_v63 = vpack.c.bf16 %v1056_v57, %v1055_v60  ;;  %v1025_v0 = vmul.f32 0.01, %v891_v61  ;;  %v1564_v1 = vpop.f32.mrb[8].mxu1 }
 0x200   : > { %v1058_v2 = vmax.f32 %v896_v58, %v1026_v62  ;;  %v906_v3 = vadd.f32 %v1564_v1, %v2090_v31  ;;  %v900_v4 = vpop.f32.mrb[9].mxu1 }
 0x201   : > { %v1057_v5 = vmax.f32 %v891_v61, %v1025_v0  ;;  %v901_v6 = vadd.f32 %v2090_v31, %v900_v4 }
 0x202   : > { %v1028_v7 = vmul.f32 0.01, %v906_v3 }
 0x203   : > { %v2108_v8 = vpack.c.bf16 %v1058_v2, %v1057_v5  ;;  %v1027_v9 = vmul.f32 0.01, %v901_v6  ;;  %v1567_v10 = vpop.f32.mrb[10].mxu1 }
 0x204   : > { %v1060_v11 = vmax.f32 %v906_v3, %v1028_v7  ;;  %v916_v12 = vadd.f32 %v1567_v10, %v2090_v31  ;;  %v910_v13 = vpop.f32.mrb[11].mxu1 }
 0x205   : > { %v1059_v14 = vmax.f32 %v901_v6, %v1027_v9  ;;  %v911_v15 = vadd.f32 %v2090_v31, %v910_v13 }
 0x206   : > { %v1030_v16 = vmul.f32 0.01, %v916_v12 }
 0x207   : > { %v2112_v17 = vpack.c.bf16 %v1060_v11, %v1059_v14  ;;  %v1029_v18 = vmul.f32 0.01, %v911_v15  ;;  %v1570_v19 = vpop.f32.mrb[12].mxu1 }
 0x208   : > { %v1062_v20 = vmax.f32 %v916_v12, %v1030_v16  ;;  %v926_v21 = vadd.f32 %v1570_v19, %v2090_v31  ;;  %v920_v22 = vpop.f32.mrb[13].mxu1 }
 0x209   : > { %v1061_v23 = vmax.f32 %v911_v15, %v1029_v18  ;;  %v921_v24 = vadd.f32 %v2090_v31, %v920_v22 }
 0x20a   : > { %v1032_v25 = vmul.f32 0.01, %v926_v21 }
 0x20b   : > { %v2116_v26 = vpack.c.bf16 %v1062_v20, %v1061_v23  ;;  %v1031_v27 = vmul.f32 0.01, %v921_v24  ;;  %v1573_v29 = vpop.f32.mrb[14].mxu1 }
 0x20c   : > { %v1064_v30 = vmax.f32 %v926_v21, %v1032_v25  ;;  %v936_v32 = vadd.f32 %v1573_v29, %v2090_v31  ;;  %v930_v33 = vpop.f32.mrb[15].mxu1 }
 0x20d   : > { %v1063_v34 = vmax.f32 %v921_v24, %v1031_v27  ;;  %v931_v35 = vadd.f32 %v2090_v31, %v930_v33 }
 0x20e   : > { %v1034_v36 = vmul.f32 0.01, %v936_v32 }
 0x20f   : > { %v2120_v37 = vpack.c.bf16 %v1064_v30, %v1063_v34  ;;  %v1033_v38 = vmul.f32 0.01, %v931_v35  ;;  %v1576_v39 = vpop.f32.mrb[16].mxu1 }
 0x210   : > { %v1066_v40 = vmax.f32 %v936_v32, %v1034_v36  ;;  %v946_v41 = vadd.f32 %v1576_v39, %v2090_v31  ;;  %v940_v42 = vpop.f32.mrb[17].mxu1 }
 0x211   : > { %v1065_v43 = vmax.f32 %v931_v35, %v1033_v38  ;;  %v941_v44 = vadd.f32 %v2090_v31, %v940_v42 }
 0x212   : > { %v1036_v46 = vmul.f32 0.01, %v946_v41 }
 0x213   : > { %v2124_v47 = vpack.c.bf16 %v1066_v40, %v1065_v43  ;;  %v1035_v48 = vmul.f32 0.01, %v941_v44  ;;  %v1579_v49 = vpop.f32.mrb[18].mxu1 }
 0x214   : > { %v1068_v50 = vmax.f32 %v946_v41, %v1036_v46  ;;  %v956_v51 = vadd.f32 %v1579_v49, %v2090_v31  ;;  %v950_v52 = vpop.f32.mrb[19].mxu1 }
 0x215   : > { %v1067_v53 = vmax.f32 %v941_v44, %v1035_v48  ;;  %v951_v55 = vadd.f32 %v2090_v31, %v950_v52 }
 0x216   : > { %v1038_v56 = vmul.f32 0.01, %v956_v51 }
 0x217   : > { %v1037_v57 = vmul.f32 0.01, %v951_v55  ;;  %v1582_v58 = vpop.f32.mrb[20].mxu1  ;;  %v1634_v59 = vpack.c.bf16 %v1068_v50, %v1067_v53 }
 0x218   : > { %v1070_v60 = vmax.f32 %v956_v51, %v1038_v56  ;;  %v966_v61 = vadd.f32 %v1582_v58, %v2090_v31  ;;  %v960_v62 = vpop.f32.mrb[21].mxu1 }
 0x219   : > { %v1069_v0 = vmax.f32 %v951_v55, %v1037_v57  ;;  %v961_v1 = vadd.f32 %v2090_v31, %v960_v62  ;;  %1635 = vmatprep.subr.bf16.mxu0 %v1634_v59 }
 0x21a   : > { %v1040_v2 = vmul.f32 0.01, %v966_v61  ;;  %1637 = vmatpush3.bf16.xpose.msra.mxu0 %v2096_v45 }
 0x21b   : > { %v1039_v3 = vmul.f32 0.01, %v961_v1  ;;  %v1638_v4 = vpack.c.bf16 %v1070_v60, %v1069_v0  ;;  %v1585_v5 = vpop.f32.mrb[22].mxu1 }
 0x21c   : > { %v1072_v6 = vmax.f32 %v966_v61, %v1040_v2  ;;  %v976_v7 = vadd.f32 %v1585_v5, %v2090_v31  ;;  %v970_v9 = vpop.f32.mrb[23].mxu1  ;;  %v1088_v61 = vpop.permute.xlu0 %1087 }
 0x21d   : > { %v1071_v10 = vmax.f32 %v961_v1, %v1039_v3  ;;  %1639 = vmatprep.subr.bf16.mxu0 %v1638_v4  ;;  %v971_v11 = vadd.f32 %v2090_v31, %v970_v9 }
 0x21e   : > { %v1042_v12 = vmul.f32 0.01, %v976_v7 }
 0x21f   : > { %v1041_v13 = vmul.f32 0.01, %v971_v11  ;;  %v1642_v14 = vpack.c.bf16 %v1072_v6, %v1071_v10  ;;  %v1588_v15 = vpop.f32.mrb[24].mxu1 }
 0x220   : > { %v1074_v16 = vmax.f32 %v976_v7, %v1042_v12  ;;  %v986_v18 = vadd.f32 %v1588_v15, %v2090_v31  ;;  %v980_v19 = vpop.f32.mrb[25].mxu1 }
 0x221   : > { %v1073_v45 = vmax.f32 %v971_v11, %v1041_v13  ;;  %v981_v20 = vadd.f32 %v2090_v31, %v980_v19 }
 0x222   : > { %1641 = vmatpush3.bf16.xpose.msra.mxu0 %v2100_v54  ;;  %v1044_v21 = vmul.f32 0.01, %v986_v18 }
 0x223   : > { %1643 = vmatprep.subr.bf16.mxu0 %v1642_v14  ;;  %v1043_v22 = vmul.f32 0.01, %v981_v20  ;;  %v1646_v23 = vpack.c.bf16 %v1074_v16, %v1073_v45  ;;  %v1591_v24 = vpop.f32.mrb[26].mxu1 }
 0x224   : > { %v1076_v25 = vmax.f32 %v986_v18, %v1044_v21  ;;  %v996_v27 = vadd.f32 %v1591_v24, %v2090_v31  ;;  %v990_v29 = vpop.f32.mrb[27].mxu1 }
 0x225   : > { %v1075_v30 = vmax.f32 %v981_v20, %v1043_v22  ;;  %v991_v32 = vadd.f32 %v2090_v31, %v990_v29 }
 0x226   : > { %v1046_v33 = vmul.f32 0.01, %v996_v27 }
 0x227   : > { %v1045_v34 = vmul.f32 0.01, %v991_v32  ;;  %v1650_v35 = vpack.c.bf16 %v1076_v25, %v1075_v30  ;;  %v1594_v36 = vpop.f32.mrb[28].mxu1 }
 0x228   : > { %v1078_v38 = vmax.f32 %v996_v27, %v1046_v33  ;;  %v1006_v39 = vadd.f32 %v1594_v36, %v2090_v31  ;;  %v1000_v54 = vpop.f32.mrb[29].mxu1 }
 0x229   : > { %v1077_v40 = vmax.f32 %v991_v32, %v1045_v34  ;;  %v1001_v41 = vadd.f32 %v2090_v31, %v1000_v54 }
 0x22a   : > { %1645 = vmatpush3.bf16.xpose.msra.mxu0 %v2104_v63  ;;  %v1048_v42 = vmul.f32 0.01, %v1006_v39 }
 0x22b   : > { %1647 = vmatprep.subr.bf16.mxu0 %v1646_v23  ;;  %v1047_v43 = vmul.f32 0.01, %v1001_v41  ;;  %v1654_v44 = vpack.c.bf16 %v1078_v38, %v1077_v40  ;;  %v1597_v46 = vpop.f32.mrb[30].mxu1 }
 0x22c   : > { %v1080_v48 = vmax.f32 %v1006_v39, %v1048_v42  ;;  %v1016_v49 = vadd.f32 %v1597_v46, %v2090_v31  ;;  %v1010_v50 = vpop.f32.mrb[31].mxu1 }
 0x22d   : > { %v1079_v51 = vmax.f32 %v1001_v41, %v1047_v43  ;;  %v1011_v52 = vadd.f32 %v2090_v31, %v1010_v50  ;;  %v1090_v31 = vlaneseq }
 0x22e   : > { %v1050_v53 = vmul.f32 0.01, %v1016_v49 }
 0x22f   : > { %v1049_v55 = vmul.f32 0.01, %v1011_v52  ;;  %v1658_v56 = vpack.c.bf16 %v1080_v48, %v1079_v51  ;;  %v1091_v59 = vshrl.u32 %v1090_v31, 7  ;;  %vm1197_vm1 = vcmp.lt.s32.totalorder %v1090_v31, 256 }
 0x230   : > { %v1082_v57 = vmax.f32 %v1016_v49, %v1050_v53 }
 0x231   : > { %v1081_v58 = vmax.f32 %v1011_v52, %v1049_v55  ;;  %v1092_v60 = vsub.s32 0, %v1091_v59 }
 0x232   : > { %1649 = vmatpush3.bf16.xpose.msra.mxu0 %v2108_v8 }
 0x233   : > { %1651 = vmatprep.subr.bf16.mxu0 %v1650_v35  ;;  %v1662_v63 = vpack.c.bf16 %v1082_v57, %v1081_v58  ;;  %v1093_v8 = vrot.slane %v1088_v61, %v1092_v60 }
 0x23a   : > { %1653 = vmatpush3.bf16.xpose.msra.mxu0 %v2112_v17 }
 0x23b   : > { %1655 = vmatprep.subr.bf16.mxu0 %v1654_v44 }
 0x242   : > { %1657 = vmatpush3.bf16.xpose.msra.mxu0 %v2116_v26 }
 0x243   : > { %1659 = vmatprep.subr.bf16.mxu0 %v1658_v56 }
 0x24a   : > { %1661 = vmatpush3.bf16.xpose.msra.mxu0 %v2120_v37 }
 0x24b   : > { %1663 = vmatprep.subr.bf16.mxu0 %v1662_v63 }
 0x252   : > { %1665 = vmatpush3.bf16.xpose.msra.mxu0 %v2124_v47 }
 0x259   : > { %1465 = vmatmul.mubr.f32.vlgmr.msra.gmra.mrb[32].mxu0 %v2084_v28  ;;  %v1829_v28 = vmov 1966171168  }
 0x25a   : > { %v1181_v5 = vunpack.c.l.s4 %v1829_v28 }
 0x25c   : > { %v1182_v6 = vunpack.c.0.s8 %v1181_v5 }
 0x25e   : > { %v1185_v9 = vsub.s32 %v1182_v6, %v1091_v59 }
 0x32c   : > { %v1160_v62 = vpop.f32.mrb[32].mxu0 }
 0x32d   : > { %v1161_v0 = vadd.f32 %v1160_v62, %v1093_v8  ;;  %v1162_v17 = vpop.f32.mrb[33].mxu0 }
 0x32e   : > { %v1163_v1 = vadd.f32 %v1162_v17, %v1093_v8 }
 0x32f   : > { %v1342_v2 = vmul.f32 -1.442695, %v1161_v0 }
 0x330   : > { %v1343_v26 = vmul.f32 -1.442695, %v1163_v1 }
 0x331   : > { %1721 = vpow2.f32 %v1342_v2 }
 0x332   : > { %1723 = vpow2.f32 %v1343_v26 }
 0x33b   : > { %v1722_v37 = vpop.eup %1721 }
 0x33c   : > { %v1724_v3 = vpop.eup %1723  ;;  %v1171_v4 = vadd.f32 1.0, %v1722_v37 }
 0x33d   : > { %v1172_v47 = vadd.f32 1.0, %v1724_v3 }
 0x33e   : > { %1725 = vrcp.f32 %v1171_v4 }
 0x33f   : > { %1727 = vrcp.f32 %v1172_v47 }
 0x348   : > { %v1726_v7 = vpop.eup %1725 }
 0x349   : > { %v1728_v10 = vpop.eup %1727 }
 0x34a   : > { %v1179_v11 = vcombine.low %v1726_v7, %v1728_v10 }
 0x34c   : > { %v1186_v12 = vrot.slane %v1179_v11, %v1185_v9 }
 0x34e   : > { %v1193_v13 = vrot.slane %v1186_v12, %v1185_v9 }
 0x350   : > { %1199 = vst.msk [vmem:[%s305_s19] sm:$0x3] %vm1197_vm1, %v1193_v13 }
 0x351   : > { %1770 = shalt.err (!%p1767_p7)
}
 0x352   : > { %s1771_s18 = scalar_lea.hbm %s2154_s6, 32  ;;  %s1775_s17 = scalar_lea.hbm %s2203_s7, 64 }
 0x353   : > { %p1772_p8 = scmp.ne.s32.totalorder %s2154_s6, %s1771_s18  ;;  %p1776_p1 = scmp.lt.u32.totalorder %s2154_s6, %s2203_s7 }
 0x354   : > { %p1777_p0 = scmp.lt.u32.totalorder %s1775_s17, %s1771_s18  ;;  %p1779_p6 = scmp.lt.u32.totalorder %s1771_s18, %s2154_s6 }
 0x355   : > { %p1773_p11 = pnand %p1772_p8, %p2214_p9 }
 0x356   : > { %p1778_p5 = por %p1777_p0, %p1776_p1 }
 0x357   : > { %p1774_p13 = pneg %p1773_p11 }
 0x358   : > { %p1780_p10 = por %p1779_p6, %p1778_p5 }
 0x35a   : > { %p1781_p12 = pnand %p1780_p10, %p1774_p13 }
 0x35c   : > { %1784 = shalt.err (!%p1781_p12)
}
 0x35d   : > { %1670 = dma.vmem_to_hbm [thread:$0]  (%p2214_p9), %s2156_s20, 32, %s2154_s6, %s1201_s23  }
 0x35e PF: > { %p1682_p2 = scmp.ge.s32.totalorder %s1823_s29, 2  ;;  %s1227_s19 = sand.u32 1, %s1811_s26  }
 0x35f   : > { %p2215_p3 = scmp.ne.s32.totalorder %s2208_s13, 0  ;;  %s1228_s21 = scalar_lea.sflag [#allocation5], %s1227_s19 }
 0x361   : > { %p1677_p4 = pnand %p1682_p2, %p2215_p3 }
 0x363   : > { %1806 = dma.done.wait (!%p1677_p4), %s1228_s21, 32  }
 0x364   : > { %1808 = vsyncadd (!%p1677_p4), %s1228_s21, 4294967264  ;;  %p20_p7 = scmp.ge.s32.totalorder %s1899_s8, 4   ;;  %s2216_s26 = smov %s1815_s27 }
 0x365   : > { %s2217_s27 = smov %s1819_s28  ;;  %s2218_s28 = smov %s1910_s11 }
 0x366   : > { %s2219_s29 = smov %s1899_s8  ;;  %22 = sbr.rel (!%p20_p7) target bundleno = 7 (0x7), region = 91 }
 0x36d   :  { %1233 = vsyncpa [#allocation4], 1 }
 0x36e   :  { %1235 = vsyncpa [#allocation4 + $0x1], 1 }
 0x36f   :  { %1236 = vsyncpa [#allocation5], 1 }
 0x370   :  { %1238 = vsyncpa [#allocation5 + $0x1], 1 }

</bundles_post_ra>
